<compile_context>
chip_gen: v6e
topology: v6e:2x2x1
jax: 0.10.0
libtpu: 0.0.40
codegen_flags: <defaults>
</compile_context>

<pallas_src>
import functools

import jax
import jax.numpy as jnp
from jax.experimental import pallas as pl
from jax.experimental.pallas import tpu as pltpu


def _layer_norm_kernel(params_ref, x_ref, o_ref, *, eps, d_model):
    """params_ref: SMEM (2,) f32 = [alpha, beta]; x_ref/o_ref: VMEM (row_block, d_model)."""
    x = x_ref[...].astype(jnp.float32)
    mean = jnp.mean(x, axis=-1, keepdims=True)
    centered = x - mean
    # torch.std(dim=-1) is unbiased by default -> divide by (d_model - 1).
    var = jnp.sum(centered * centered, axis=-1, keepdims=True) * (1.0 / (d_model - 1))
    std = jnp.sqrt(var)
    alpha = params_ref[0]
    beta = params_ref[1]
    o_ref[...] = (alpha * centered / (std + eps) + beta).astype(o_ref.dtype)


def _pick_row_block(n_rows, max_block=512):
    """Largest row block (multiple of 8, <= max_block) dividing n_rows; amortizes
    the ~0.35us/step grid overhead while staying far under VMEM limits."""
    if n_rows <= max_block:
        return n_rows
    blk = (max_block // 8) * 8
    while blk >= 8:
        if n_rows % blk == 0:
            return blk
        blk -= 8
    return n_rows  # fallback: single block (row count not a multiple of 8)


def layer_norm(x2d, alpha, beta, *, eps=1e-6, row_block=None):
    """Pallas equivalent of LayerNormization.forward on a (N, d_model) slab."""
    n_rows, d_model = x2d.shape
    if row_block is None:
        row_block = _pick_row_block(n_rows)
    assert n_rows % row_block == 0

    params = jnp.concatenate(
        [jnp.asarray(alpha, jnp.float32).reshape(1),
         jnp.asarray(beta, jnp.float32).reshape(1)])

    kernel = functools.partial(_layer_norm_kernel, eps=float(eps), d_model=d_model)

    return pl.pallas_call(
        kernel,
        out_shape=jax.ShapeDtypeStruct((n_rows, d_model), x2d.dtype),
        grid_spec=pltpu.PrefetchScalarGridSpec(
            num_scalar_prefetch=0,
            grid=(n_rows // row_block,),
            in_specs=[
                # alpha/beta live in SMEM as scalars (no VMEM traffic for params)
                pl.BlockSpec(memory_space=pltpu.MemorySpace.SMEM),
                # x streamed HBM->VMEM one (row_block, d_model) tile per step
                pl.BlockSpec((row_block, d_model), lambda i: (i, 0)),
            ],
            out_specs=pl.BlockSpec((row_block, d_model), lambda i: (i, 0)),
        ),
        compiler_params=pltpu.CompilerParams(
            # row blocks are fully independent -> megacore-shardable on v7x,
            # harmless on single-TC v5e/v6e.
            dimension_semantics=("parallel",),
        ),
    )(params, x2d)


def encoder_forward(x, mask, layers, alpha, beta, *, eps=1e-6, row_block=None):
    """Encoder.forward: apply each layer(x, mask), then the Pallas layer norm."""
    # TODO(synk): the encoder sub-layers are an opaque nn.ModuleList in the spec
    # (no definitions provided); they are applied here as user-supplied JAX
    # callables, and only the final LayerNormization runs as a Pallas kernel.
    for layer in layers:
        x = layer(x, mask)
    b, s, d = x.shape
    out2d = layer_norm(x.reshape(b * s, d), alpha, beta, eps=eps, row_block=row_block)
    return out2d.reshape(b, s, d)


if __name__ == "__main__":
    # Small deterministic setup consistent with the Encoder forward:
    # x: (batch=2, seq=8, d_model=32), mask unused by the (empty) layer stack.
    B, S, D = 2, 8, 32
    key = jax.random.PRNGKey(0)
    k_x, _ = jax.random.split(key)

    x = jax.random.normal(k_x, (B, S, D), dtype=jnp.float32)
    mask = jnp.ones((B, 1, S, S), dtype=jnp.bool_)

    alpha = jnp.ones((1,), dtype=jnp.float32)   # nn.Parameter(torch.ones(1))
    beta = jnp.zeros((1,), dtype=jnp.float32)   # nn.Parameter(torch.zeros(1))
    eps = 1e-6
    layers = ()                                 # spec does not define layer contents

    out = encoder_forward(x, mask, layers, alpha, beta, eps=eps, row_block=8)
    jax.block_until_ready(out)

    # Pure-JAX reference matching the torch module exactly (unbiased std, eps on std).
    xr = x
    for layer in layers:
        xr = layer(xr, mask)
    mean = xr.mean(axis=-1, keepdims=True)
    var = jnp.sum((xr - mean) ** 2, axis=-1, keepdims=True) / (D - 1)
    std = jnp.sqrt(var)
    ref = alpha[0] * (xr - mean) / (std + eps) + beta[0]

    assert out.shape == (B, S, D)
    assert out.dtype == jnp.float32
    assert jnp.allclose(out, ref, atol=1e-5, rtol=1e-5), float(jnp.max(jnp.abs(out - ref)))
    print("KERNEL_OK")
</pallas_src>

<mosaic_0001>
module attributes {stable_mosaic.version = 11 : i64} {
  func.func @_layer_norm_kernel(%arg0: i32, %arg1: memref<2xf32, #tpu.memory_space<smem>>, %arg2: memref<8x32xf32, #tpu.memory_space<vmem>>, %arg3: memref<8x32xf32, #tpu.memory_space<vmem>>) attributes {dimension_semantics = [#tpu.dimension_semantics<parallel>], iteration_bounds = array<i64: 2>, scalar_prefetch = 0 : i64, scratch_operands = 0 : i64, tpu.core_type = #tpu.core_type<tc>, window_params = [{transform_indices = @transform_0, window_bounds = array<i64: 2>}, {transform_indices = @transform_1, window_bounds = array<i64: 8, 32>}, {transform_indices = @transform_2, window_bounds = array<i64: 8, 32>}]} {
    %c0 = arith.constant 0 : index
    %c0_0 = arith.constant 0 : index
    %0 = vector.load %arg2[%c0, %c0_0] : memref<8x32xf32, #tpu.memory_space<vmem>>, vector<8x32xf32>
    %cst = arith.constant dense<0.000000e+00> : vector<8xf32>
    %1 = vector.multi_reduction <add>, %0, %cst [1] : vector<8x32xf32> to vector<8xf32>
    %2 = vector.shape_cast %1 : vector<8xf32> to vector<8x1xf32>
    %cst_1 = arith.constant 3.200000e+01 : f32
    %3 = vector.broadcast %cst_1 : f32 to vector<8x1xf32>
    %4 = arith.divf %2, %3 : vector<8x1xf32>
    %5 = vector.broadcast %4 : vector<8x1xf32> to vector<8x32xf32>
    %6 = arith.subf %0, %5 : vector<8x32xf32>
    %7 = arith.mulf %6, %6 : vector<8x32xf32>
    %cst_2 = arith.constant dense<0.000000e+00> : vector<8xf32>
    %8 = vector.multi_reduction <add>, %7, %cst_2 [1] : vector<8x32xf32> to vector<8xf32>
    %9 = vector.shape_cast %8 : vector<8xf32> to vector<8x1xf32>
    %cst_3 = arith.constant 0.0322580636 : f32
    %10 = vector.broadcast %cst_3 : f32 to vector<8x1xf32>
    %11 = arith.mulf %9, %10 : vector<8x1xf32>
    %12 = math.sqrt %11 : vector<8x1xf32>
    %c0_4 = arith.constant 0 : index
    %13 = memref.load %arg1[%c0_4] : memref<2xf32, #tpu.memory_space<smem>>
    %c1 = arith.constant 1 : index
    %14 = memref.load %arg1[%c1] : memref<2xf32, #tpu.memory_space<smem>>
    %15 = vector.broadcast %13 : f32 to vector<8x32xf32>
    %16 = arith.mulf %15, %6 : vector<8x32xf32>
    %cst_5 = arith.constant 9.99999997E-7 : f32
    %17 = vector.broadcast %cst_5 : f32 to vector<8x1xf32>
    %18 = arith.addf %12, %17 : vector<8x1xf32>
    %19 = vector.broadcast %18 : vector<8x1xf32> to vector<8x32xf32>
    %20 = arith.divf %16, %19 : vector<8x32xf32>
    %21 = vector.broadcast %14 : f32 to vector<8x32xf32>
    %22 = arith.addf %20, %21 : vector<8x32xf32>
    %c0_6 = arith.constant 0 : index
    %c0_7 = arith.constant 0 : index
    %23 = vector.load %arg3[%c0_6, %c0_7] : memref<8x32xf32, #tpu.memory_space<vmem>>, vector<8x32xf32>
    tpu.vector_store %arg3[%c0_6, %c0_7], %22 {strides = array<i32>} : memref<8x32xf32, #tpu.memory_space<vmem>>, vector<8x32xf32>,
    return
  }
  func.func @transform_0(%arg0: i32) -> i32 {
    %c0_i32 = arith.constant 0 : i32
    %c0_i32_0 = arith.constant 0 : i32
    return %c0_i32 : i32
  }
  func.func @transform_1(%arg0: i32) -> (i32, i32) {
    %c0_i32 = arith.constant 0 : i32
    %c0_i32_0 = arith.constant 0 : i32
    return %arg0, %c0_i32 : i32, i32
  }
  func.func @transform_2(%arg0: i32) -> (i32, i32) {
    %c0_i32 = arith.constant 0 : i32
    %c0_i32_0 = arith.constant 0 : i32
    return %arg0, %c0_i32 : i32, i32
  }
}

</mosaic_0001>

<bundles_post_ra>
// kernel: tpu_custom_call.1
= control target key start
LH: loop header
LB: loop body
LE: loop exit
PB: predicated region body
PF: predicated region fallthrough
CT: control target
= control target key end

     0   :  { %7 = vsyncpa [#allocation5], 0  ;;  %s653_s0 = inlined_call_operand.hbm [shape: f32[2], index: 0, kind: input, shape index: {}]   ;;  %s654_s1 = inlined_call_operand.hbm [shape: f32[16,32], index: 1, kind: input, shape index: {}]   ;;  %s655_s2 = inlined_call_operand.hbm [shape: f32[16,32], index: 2, kind: output, shape index: {}]  }
   0x1   :  { %8 = vsyncpa [#allocation3], 0 }
   0x2   :  { %10 = vsyncpa [#allocation3 + $0x1], 0 }
   0x3   :  { %11 = vsyncpa [#allocation4], 0 }
   0x4   :  { %13 = vsyncpa [#allocation4 + $0x1], 0  ;;  %s500_s9 = smov 0   ;;  %s502_s10 = smov 0  }
   0x5   :  { %s504_s11 = smov 0   ;;  %s506_s12 = smov 0  }
   0x6 LB: > { %s521_s13 = sadd.s32 4294967295, %s480_s12   ;;  %s297_s14 = sadd.s32 4294967294, %s480_s12   ;;  %s480_s12 = sphi %s506_s12, %s675_s12   ;;  %s476_s11 = sphi %s504_s11, %s674_s11   ;;  %s472_s10 = sphi %s502_s10, %s673_s10   ;;  %s468_s9 = sphi %s500_s9, %s672_s9  }
   0x7   : > { %p60_p0 = scmp.ne.s32.totalorder %s472_s10, %s468_s9  ;;  %p656_p1 = scmp.eq.s32.totalorder %s521_s13, 0 }
   0x8   : > { %p84_p2 = scmp.eq.s32.totalorder %s521_s13, 1  ;;  %p90_p3 = scmp.eq.s32.totalorder %s297_s14, 1 }
   0x9   : > { %p530_p4 = por %p656_p1, %p60_p0  ;;  %p298_p5 = scmp.ge.s32.totalorder %s480_s12, 1 }
   0xa   : > { %p535_p6 = por %p90_p3, %p60_p0  ;;  %p97_p7 = scmp.lt.s32.totalorder %s480_s12, 3 }
   0xb   : > { %s660_s15 = scalar_select %p530_p4, 1, 0 }
   0xc   : > { %s661_s16 = scalar_select %p535_p6, 1, 0 }
   0xd   : > { %p540_p8 = pnand %p298_p5, %p97_p7  ;;  %s546_s18 = sadd.s32 1, %s480_s12  }
   0xe   : > { %s44_s19 = ssub.s32 %s480_s12, %s546_s18  ;;  %s47_s20 = sadd.s32 1, %s476_s11 }
   0xf   : > { %s662_s17 = scalar_select %p540_p8, 1, 0 }
  0x10   : > { %p320_p10 = pneg %p540_p8  ;;  %p45_p12 = scmp.eq.s32.totalorder %s44_s19, 0 }
  0x11   : > { %p54_p13 = scmp.ne.s32.totalorder %s476_s11, %s472_s10  ;;  %p55_p0 = scmp.eq.s32.totalorder %s480_s12, 0 }
  0x12   : > { %p321_p11 = pnand %p320_p10, %p656_p1  ;;  %p333_p3 = scmp.lt.s32.totalorder %s480_s12, 2 }
  0x13   : > { %s482_s21 = smov [#allocation2]   ;;  %p56_p5 = por %p55_p0, %p54_p13 }
  0x14   : > { %323 = dma.hbm_to_smem (!%p321_p11), %s653_s0, 16, %s482_s21, [#allocation5]  }
  0x15   : > { %s563_s24 = scalar_select %p45_p12, %s476_s11, %s47_s20  }
  0x16   : > { %p567_p7 = por %p84_p2, %p54_p13  ;;  %s119_s26 = sand.u32 1, %s476_s11  }
  0x17   : > { %s302_s27 = sshll.u32 %s480_s12, 7  ;;  %s301_s28 = sshll.u32 %s119_s26, 3 }
  0x18   : > { %s663_s25 = scalar_select %p567_p7, 1, 0 }
  0x19   : > { %s576_s3 = scalar_lea.hbm %s654_s1, %s302_s27  ;;  %s123_s4 = scalar_lea.vmem [#allocation6], %s301_s28 }
  0x1a   : > { %s130_s5 = sshll.u32 %s123_s4, 4  ;;  %p578_p10 = pnand %p333_p3, %p56_p5  ;;  %s131_s5 = int_to_ptr.vmem [resolvable:$true] %s130_s5 }
  0x1b   : > { %s120_s7 = scalar_lea.sflag [#allocation3], %s119_s26  ;;  %s384_s8 = scalar_lea.hbm %s576_s3, 128 }
  0x1c   : > { %p385_p2 = scmp.ne.s32.totalorder %s576_s3, %s384_s8  ;;  %p386_p11 = pneg %p578_p10 }
  0x1d   : > { %s389_s20 = scalar_lea.hbm %s654_s1, 256  ;;  %p390_p0 = scmp.lt.s32.totalorder %s576_s3, %s654_s1 }
  0x1e   : > { %p387_p12 = pnand %p386_p11, %p385_p2  ;;  %p391_p3 = scmp.lt.s32.totalorder %s389_s20, %s384_s8 }
  0x20   : > { %p388_p13 = pneg %p387_p12  ;;  %p392_p5 = por %p391_p3, %p390_p0 }
  0x22   : > { %p393_p9 = pnand %p392_p5, %p388_p13 }
  0x24   : > { %396 = shalt.err (!%p393_p9)
}
  0x25   : > { %s397_s23 = scalar_lea.vmem %s131_s5, 128  ;;  %s483_s26 = smov [#allocation6]  }
  0x26   : > { %p398_p1 = scmp.ne.s32.totalorder %s131_s5, %s397_s23  ;;  %s402_s27 = sshll.u32 %s483_s26, 4  ;;  %s403_s27 = int_to_ptr.vmem [resolvable:$false] %s402_s27 }
  0x27   : > { %s404_s28 = scalar_lea.vmem %s403_s27, 256  ;;  %p405_p2 = scmp.lt.s32.totalorder %s131_s5, %s403_s27 }
  0x28   : > { %p400_p6 = pnand %p398_p1, %p386_p11  ;;  %p406_p12 = scmp.lt.s32.totalorder %s404_s28, %s397_s23 }
  0x2a   : > { %p401_p7 = pneg %p400_p6  ;;  %p407_p4 = por %p406_p12, %p405_p2 }
  0x2c   : > { %p408_p8 = pnand %p407_p4, %p401_p7 }
  0x2e   : > { %411 = shalt.err (!%p408_p8)
}
  0x2f   : > { %327 = dma.hbm_to_vmem [thread:$0]  (!%p578_p10), %s576_s3, 128, %s131_s5, %s120_s7  }
  0x30   : > { %p665_p13 = scmp.ne.s32.totalorder %s662_s17, 0 }
  0x31   : > { %p666_p9 = scmp.eq.s32.totalorder (!%p665_p13), %s521_s13, 0 }
  0x32   : > { %139 = sbr.rel (%p665_p13) target bundleno = 400 (0x190), region = 28 }
  0x37   : > { %455 = dma.done.wait (%p666_p9), [#allocation5], 16   ;;  %p667_p1 = pmov %p666_p9 }
  0x38   : > { %s603_s29 = sand.u32 1, %s472_s10   ;;  %p668_p4 = scmp.ne.s32.totalorder %s660_s15, 0 }
  0x39   : > { %457 = vsyncadd (%p667_p1), [#allocation5], 4294967280  ;;  %s305_s30 = sshll.u32 %s603_s29, 3  ;;  %s146_s4 = scalar_lea.sflag [#allocation3], %s603_s29 }
  0x3a   : > { %s149_s3 = scalar_lea.vmem [#allocation6], %s305_s30 }
  0x3b   : > { %459 = dma.done.wait (%p668_p4), %s146_s4, 128  }
  0x3c   : > { %461 = vsyncadd (%p668_p4), %s146_s4, 4294967168 }
  0x3d   : > { %154 = sfence }
  0x3e   : > { %v171_v0 = vld [vmem:[%s149_s3] sm:$0xff]  ;;  %vm172_vm0 = vcmask 261120   ;;  %s191_s15 = sld [smem:[#allocation2]]  ;;  %s309_s5 = sshll.u32 %s521_s13, 7 }
  0x3f   : > { %v173_v1 = vsel %vm172_vm0, %v171_v0, 0.0  ;;  %s307_s17 = sld [smem:[#allocation2 + $0x1]]  ;;  %s170_s6 = scalar_lea.vmem [#allocation7], %s305_s30 }
  0x40   : > { %174 = vadd.xlane.f32.xlu0 %v173_v1  ;;  %s215_s7 = sshll.u32 %s170_s6, 4  ;;  %s213_s19 = scalar_lea.hbm %s655_s2, %s309_s5  ;;  %s216_s7 = int_to_ptr.vmem [resolvable:$true] %s215_s7 }
  0x41   : > { %s202_s20 = scalar_lea.sflag [#allocation4], %s603_s29  ;;  %s412_s21 = scalar_lea.vmem %s216_s7, 128 }
  0x42   : > { %p413_p6 = scmp.ne.s32.totalorder %s216_s7, %s412_s21  ;;  %p669_p8 = scmp.ne.s32.totalorder %s663_s25, 0 }
  0x43   : > { %s484_s22 = smov [#allocation7]  }
  0x44   : > { %v193_v15 = vstv %s191_s15  ;;  %p414_p7 = pnand %p413_p6, %p669_p8  ;;  %s416_s13 = sshll.u32 %s484_s22, 4  ;;  %s417_s13 = int_to_ptr.vmem [resolvable:$false] %s416_s13 }
  0x45   : > { %v198_v18 = vstv %s307_s17  ;;  %s418_s23 = scalar_lea.vmem %s417_s13, 256  ;;  %p419_p11 = scmp.lt.s32.totalorder %s216_s7, %s417_s13 }
  0x46   : > { %p415_p10 = pneg %p414_p7  ;;  %p420_p0 = scmp.lt.s32.totalorder %s418_s23, %s412_s21 }
  0x48   : > { %p421_p3 = por %p420_p0, %p419_p11 }
  0x4a   : > { %p422_p5 = pnand %p421_p3, %p415_p10 }
  0xc9   : > { %v175_v2 = vpop.xlane.xlu0 %174 }
  0xca   : > { %v177_v3 = vmul.f32 0.03125, %v175_v2 }
  0xcc   : > { %v178_v4 = vsub.f32 %v171_v0, %v177_v3 }
  0xce   : > { %v179_v5 = vmul.f32 %v178_v4, %v178_v4  ;;  %v194_v16 = vmul.f32 %v193_v15, %v178_v4 }
  0xd0   : > { %v180_v6 = vsel %vm172_vm0, %v179_v5, 0.0 }
  0xd1   : > { %181 = vadd.xlane.f32.xlu0 %v180_v6 }
 0x15a   : > { %v182_v7 = vpop.xlane.xlu0 %181 }
 0x15b   : > { %v183_v8 = vmul.f32 0.032258064, %v182_v7 }
 0x15d   : > { %369 = vrsqrt.f32 %v183_v8  ;;  %vm186_vm1 = vcmp.eq.f32.partialorder %v183_v8, inf  ;;  %v189_v11 = vand.u32 2147483648, %v183_v8  ;;  %vm188_vm2 = vcmp.eq.f32.partialorder %v183_v8, 0.0 }
 0x16a   : > { %v370_v9 = vpop.eup %369 }
 0x16b   : > { %v185_v10 = vmul.f32 %v370_v9, %v183_v8 }
 0x16d   : > { %v187_v12 = vsel %vm186_vm1, %v183_v8, %v185_v10 }
 0x16e   : > { %v190_v13 = vsel %vm188_vm2, %v189_v11, %v187_v12 }
 0x16f   : > { %v195_v14 = vadd.f32 1e-06, %v190_v13 }
 0x171   : > { %371 = vrcp.f32 %v195_v14 }
 0x17e   : > { %v372_v17 = vpop.eup %371 }
 0x17f   : > { %v197_v19 = vmul.f32 %v372_v17, %v194_v16 }
 0x181   : > { %v199_v20 = vadd.f32 %v198_v18, %v197_v19 }
 0x183   : > { %200 = vst.msk [vmem:[%s170_s6] sm:$0xff] %vm172_vm0, %v199_v20 }
 0x184   : > { %425 = shalt.err (!%p422_p5)
}
 0x185   : > { %s426_s26 = scalar_lea.hbm %s213_s19, 128  ;;  %s430_s29 = scalar_lea.hbm %s655_s2, 256 }
 0x186   : > { %p427_p2 = scmp.ne.s32.totalorder %s213_s19, %s426_s26  ;;  %p431_p9 = scmp.lt.s32.totalorder %s213_s19, %s655_s2 }
 0x187   : > { %p432_p1 = scmp.lt.s32.totalorder %s430_s29, %s426_s26 }
 0x188   : > { %p428_p12 = pnand %p427_p2, %p669_p8 }
 0x189   : > { %p433_p4 = por %p432_p1, %p431_p9 }
 0x18a   : > { %p429_p13 = pneg %p428_p12 }
 0x18c   : > { %p434_p6 = pnand %p433_p4, %p429_p13 }
 0x18e   : > { %437 = shalt.err (!%p434_p6)
}
 0x18f   : > { %318 = dma.vmem_to_hbm [thread:$0]  (%p669_p8), %s216_s7, 128, %s213_s19, %s202_s20  }
 0x190 PF: > { %s227_s3 = sand.u32 1, %s468_s9   ;;  %p670_p7 = scmp.ne.s32.totalorder %s661_s16, 0 }
 0x191   : > { %p671_p10 = scmp.ge.s32.totalorder %s480_s12, 2  ;;  %s228_s15 = scalar_lea.sflag [#allocation4], %s227_s3 }
 0x193   : > { %p329_p11 = pnand %p671_p10, %p670_p7 }
 0x195   : > { %p330_p0 = pneg %p329_p11 }
 0x197   : > { %463 = dma.done.wait (%p330_p0), %s228_s15, 128  }
 0x198   : > { %465 = vsyncadd (%p330_p0), %s228_s15, 4294967168  ;;  %p16_p3 = scmp.ge.s32.totalorder %s546_s18, 4   ;;  %s672_s9 = smov %s472_s10 }
 0x199   : > { %s673_s10 = smov %s476_s11  ;;  %s674_s11 = smov %s563_s24 }
 0x19a   : > { %s675_s12 = smov %s546_s18  ;;  %18 = sbr.rel (!%p16_p3) target bundleno = 6 (0x6), region = 78 }
 0x19f   :  { %233 = vsyncpa [#allocation3], 1 }
 0x1a0   :  { %235 = vsyncpa [#allocation3 + $0x1], 1 }
 0x1a1   :  { %236 = vsyncpa [#allocation4], 1 }
 0x1a2   :  { %238 = vsyncpa [#allocation4 + $0x1], 1 }
 0x1a3   :  { %239 = vsyncpa [#allocation5], 1 }
 0x1a4   :  { %241 = vsyncpa [#allocation5 + $0x1], 1 }

</bundles_post_ra>
